<compile_context>
chip_gen: v5e
topology: v5e:2x2
jax: 0.10.0
libtpu: 0.0.40
codegen_flags: <defaults>
</compile_context>

<pallas_src>
import functools

import jax
import jax.numpy as jnp
from jax import lax
from jax.experimental import pallas as pl
from jax.experimental.pallas import tpu as pltpu

_LANES = 128
_SUBLANES = 8
_MAX_ROW_TILE = 2048   # 2048x128 f32 = 1 MiB per input tile
_NUM_PARALLEL = 2      # leading "parallel" grid axis -> 2 TCs on v7x


def _rmsle_kernel(pred_ref, act_ref, out_ref, *, rows, row_tile, n_k,
                  num_blocks, needs_mask, has_clamped):
    p = pl.program_id(0)   # parallel (per-core) chunk
    k = pl.program_id(1)   # reduction step within the chunk

    @pl.when(k == 0)
    def _():
        out_ref[...] = jnp.zeros_like(out_ref)

    blk = p * n_k + k      # logical (unclamped) block index

    def accumulate(masked):
        # Cast in-kernel so bf16 inputs stream at half the HBM bytes.
        x = pred_ref[...].astype(jnp.float32)
        y = act_ref[...].astype(jnp.float32)
        # Two logs + one subtract: same EUP traffic as log((x+1)/(y+1)) but
        # without the divide's reciprocal + Newton-refinement VPU chain.
        d = jnp.log(x + 1.0) - jnp.log(y + 1.0)
        sq = d * d
        if masked:
            # Only the single partial boundary block sees this.  Keep select
            # (NOT multiply) semantics: Pallas out-of-bounds rows are garbage
            # and may contain NaN/Inf.
            row_idx = blk * row_tile + lax.broadcasted_iota(
                jnp.int32, (row_tile, _LANES), 0)
            sq = jnp.where(row_idx < rows, sq, 0.0)
        # Pure-VPU accumulate into the vreg-shaped resident output block.
        out_ref[0] += jnp.sum(
            sq.reshape(row_tile // _SUBLANES, _SUBLANES, _LANES), axis=0)

    if needs_mask:
        # Interior blocks: unmasked fast path.  Boundary block: masked.
        # Clamped duplicate blocks (blk >= num_blocks) do nothing.
        @pl.when(blk < num_blocks - 1)
        def _():
            accumulate(masked=False)

        @pl.when(blk == num_blocks - 1)
        def _():
            accumulate(masked=True)
    elif has_clamped:
        @pl.when(blk < num_blocks)
        def _():
            accumulate(masked=False)
    else:
        accumulate(masked=False)


def rmsle_loss(pred, actual):
    assert pred.shape == actual.shape
    n_elems = pred.size
    assert n_elems > 0

    # Do NOT pre-cast dtype here: the kernel upcasts in-body, so bf16 inputs
    # stream straight from HBM at 2 B/elem.
    pred_f = jnp.ravel(pred)
    act_f = jnp.ravel(actual)

    # Layout: lane-dense (rows, 128) slab.  Zero padding is harmless because
    # log(0+1)-log(0+1)=0 and the mean divides by the true n_elems.
    #   * n % 128 == 0 and rows > tile : zero-copy path (reshape is a bitcast)
    #   * n % 128 != 0                 : pad flat length to a 128 multiple
    #   * small single-block inputs    : also round rows up to a multiple of 8
    #                                    (sub-MiB copy) so tiling stays (8,128).
    pad_lane = (-n_elems) % _LANES
    rows = (n_elems + pad_lane) // _LANES
    if rows <= _MAX_ROW_TILE:
        rows += (-rows) % _SUBLANES
    total_pad = rows * _LANES - n_elems
    if total_pad:
        pred_f = jnp.pad(pred_f, (0, total_pad))
        act_f = jnp.pad(act_f, (0, total_pad))

    pred2d = pred_f.reshape(rows, _LANES)
    act2d = act_f.reshape(rows, _LANES)

    row_tile = min(_MAX_ROW_TILE, rows)
    num_blocks = pl.cdiv(rows, row_tile)
    # Split across TCs only when there is enough work that a possible clamped
    # duplicate block is negligible.
    n_p = _NUM_PARALLEL if num_blocks >= 4 else 1
    n_k = pl.cdiv(num_blocks, n_p)

    def in_map(p, k):
        # Clamp so the DMA never points past the last real block; the clamped
        # duplicate block is skipped entirely inside the kernel.
        return (jnp.minimum(p * n_k + k, num_blocks - 1), 0)

    kernel = functools.partial(
        _rmsle_kernel,
        rows=rows, row_tile=row_tile, n_k=n_k, num_blocks=num_blocks,
        needs_mask=(rows % row_tile != 0),
        has_clamped=(n_p * n_k > num_blocks))

    itemsize = jnp.dtype(pred.dtype).itemsize
    n_total = rows * _LANES
    cost = pl.CostEstimate(
        flops=6 * n_total,
        transcendentals=2 * n_total,
        bytes_accessed=2 * n_total * itemsize + n_p * _SUBLANES * _LANES * 4)

    partials = pl.pallas_call(
        kernel,
        out_shape=jax.ShapeDtypeStruct((n_p, _SUBLANES, _LANES), jnp.float32),
        grid_spec=pltpu.PrefetchScalarGridSpec(
            num_scalar_prefetch=0,
            grid=(n_p, n_k),
            in_specs=[
                pl.BlockSpec((row_tile, _LANES), in_map),
                pl.BlockSpec((row_tile, _LANES), in_map),
            ],
            out_specs=pl.BlockSpec((1, _SUBLANES, _LANES),
                                   lambda p, k: (p, 0, 0)),
        ),
        compiler_params=pltpu.CompilerParams(
            dimension_semantics=(pltpu.PARALLEL, pltpu.ARBITRARY)),
        cost_estimate=cost,
    )(pred2d, act2d)

    # Tiny epilogue, off the critical path: combine partials, mean, sqrt.
    return jnp.sqrt(jnp.sum(partials) / jnp.float32(n_elems))


def _reference(pred, actual):
    p = pred.astype(jnp.float32)
    a = actual.astype(jnp.float32)
    return jnp.sqrt(jnp.mean((jnp.log(p + 1.0) - jnp.log(a + 1.0)) ** 2))


if __name__ == "__main__":
    key = jax.random.PRNGKey(0)

    # (shape, dtype, rtol): cover the single-block fast path, the ragged pad
    # path, a multi-block zero-copy path (2-way parallel split, no mask), a
    # large ragged path (parallel split + clamp guard + boundary mask), and
    # bf16 pass-through.
    checks = [
        ((2, 4, 16, 16), jnp.float32, 1e-5),     # 2048 elems, single block
        ((3, 5, 9, 17), jnp.float32, 1e-5),      # ragged -> padded small slab
        ((1_048_576,), jnp.float32, 1e-4),       # 4 blocks, n_p=2, zero-copy
        ((1_050_000,), jnp.float32, 1e-4),       # clamp guard + boundary mask
        ((2, 4, 16, 16), jnp.bfloat16, 1e-3),    # narrow dtype, in-kernel cast
    ]
    for shape, dtype, rtol in checks:
        key, k1, k2 = jax.random.split(key, 3)
        pred = (jax.random.uniform(k1, shape, dtype=jnp.float32) * 3.0).astype(dtype)
        actual = (jax.random.uniform(k2, shape, dtype=jnp.float32) * 3.0).astype(dtype)
        loss = jax.block_until_ready(rmsle_loss(pred, actual))
        ref = _reference(pred, actual)
        assert jnp.allclose(loss, ref, rtol=rtol, atol=1e-6), (shape, dtype, loss, ref)

    print("KERNEL_OK")
</pallas_src>

<mosaic_0001>
module attributes {stable_mosaic.version = 11 : i64} {
  func.func @_rmsle_kernel(%arg0: i32, %arg1: i32, %arg2: memref<16x128xf32, #tpu.memory_space<vmem>>, %arg3: memref<16x128xf32, #tpu.memory_space<vmem>>, %arg4: memref<1x8x128xf32, #tpu.memory_space<vmem>>) attributes {dimension_semantics = [#tpu.dimension_semantics<parallel>, #tpu.dimension_semantics<arbitrary>], iteration_bounds = array<i64: 1, 1>, scalar_prefetch = 0 : i64, scratch_operands = 0 : i64, tpu.core_type = #tpu.core_type<tc>, window_params = [{transform_indices = @transform_0, window_bounds = array<i64: 16, 128>}, {transform_indices = @transform_1, window_bounds = array<i64: 16, 128>}, {transform_indices = @transform_2, window_bounds = array<i64: 1, 8, 128>}]} {
    %c0_i32 = arith.constant 0 : i32
    %0 = arith.cmpi eq, %arg1, %c0_i32 : i32
    %1 = arith.extui %0 : i1 to i32
    %c0_i32_0 = arith.constant 0 : i32
    %2 = arith.cmpi ne, %1, %c0_i32_0 : i32
    scf.if %2 {
      %cst_12 = arith.constant 0.000000e+00 : f32
      %21 = vector.broadcast %cst_12 : f32 to vector<1x8x128xf32>
      %c0_13 = arith.constant 0 : index
      %c0_14 = arith.constant 0 : index
      %c0_15 = arith.constant 0 : index
      %22 = vector.load %arg4[%c0_13, %c0_14, %c0_15] : memref<1x8x128xf32, #tpu.memory_space<vmem>>, vector<1x8x128xf32>
      tpu.vector_store %arg4[%c0_13, %c0_14, %c0_15], %21 {strides = array<i32>} : memref<1x8x128xf32, #tpu.memory_space<vmem>>, vector<1x8x128xf32>,
    } else {
    }
    %c0 = arith.constant 0 : index
    %c0_1 = arith.constant 0 : index
    %3 = vector.load %arg2[%c0, %c0_1] : memref<16x128xf32, #tpu.memory_space<vmem>>, vector<16x128xf32>
    %c0_2 = arith.constant 0 : index
    %c0_3 = arith.constant 0 : index
    %4 = vector.load %arg3[%c0_2, %c0_3] : memref<16x128xf32, #tpu.memory_space<vmem>>, vector<16x128xf32>
    %cst = arith.constant 1.000000e+00 : f32
    %5 = vector.broadcast %cst : f32 to vector<16x128xf32>
    %6 = arith.addf %3, %5 : vector<16x128xf32>
    %7 = math.log %6 : vector<16x128xf32>
    %cst_4 = arith.constant 1.000000e+00 : f32
    %8 = vector.broadcast %cst_4 : f32 to vector<16x128xf32>
    %9 = arith.addf %4, %8 : vector<16x128xf32>
    %10 = math.log %9 : vector<16x128xf32>
    %11 = arith.subf %7, %10 : vector<16x128xf32>
    %12 = arith.mulf %11, %11 : vector<16x128xf32>
    %c0_5 = arith.constant 0 : index
    %c0_6 = arith.constant 0 : index
    %c0_7 = arith.constant 0 : index
    %13 = vector.load %arg4[%c0_5, %c0_6, %c0_7] : memref<1x8x128xf32, #tpu.memory_space<vmem>>, vector<1x8x128xf32>
    %14 = vector.shape_cast %13 : vector<1x8x128xf32> to vector<8x128xf32>
    %15 = vector.shape_cast %12 : vector<16x128xf32> to vector<2x8x128xf32>
    %cst_8 = arith.constant dense<0.000000e+00> : vector<8x128xf32>
    %16 = vector.multi_reduction <add>, %15, %cst_8 [0] : vector<2x8x128xf32> to vector<8x128xf32>
    %17 = arith.addf %14, %16 : vector<8x128xf32>
    %c0_9 = arith.constant 0 : index
    %c0_10 = arith.constant 0 : index
    %c0_11 = arith.constant 0 : index
    %18 = vector.load %arg4[%c0_9, %c0_10, %c0_11] : memref<1x8x128xf32, #tpu.memory_space<vmem>>, vector<1x8x128xf32>
    %19 = vector.shape_cast %18 : vector<1x8x128xf32> to vector<8x128xf32>
    %20 = vector.shape_cast %17 : vector<8x128xf32> to vector<1x8x128xf32>
    tpu.vector_store %arg4[%c0_9, %c0_10, %c0_11], %20 {strides = array<i32>} : memref<1x8x128xf32, #tpu.memory_space<vmem>>, vector<1x8x128xf32>,
    return
  }
  func.func @transform_0(%arg0: i32, %arg1: i32) -> (i32, i32) {
    %c1_i32 = arith.constant 1 : i32
    %0 = arith.muli %arg0, %c1_i32 : i32
    %1 = arith.addi %0, %arg1 : i32
    %c0_i32 = arith.constant 0 : i32
    %2 = arith.minsi %1, %c0_i32 : i32
    %c0_i32_0 = arith.constant 0 : i32
    %c0_i32_1 = arith.constant 0 : i32
    return %2, %c0_i32_0 : i32, i32
  }
  func.func @transform_1(%arg0: i32, %arg1: i32) -> (i32, i32) {
    %c1_i32 = arith.constant 1 : i32
    %0 = arith.muli %arg0, %c1_i32 : i32
    %1 = arith.addi %0, %arg1 : i32
    %c0_i32 = arith.constant 0 : i32
    %2 = arith.minsi %1, %c0_i32 : i32
    %c0_i32_0 = arith.constant 0 : i32
    %c0_i32_1 = arith.constant 0 : i32
    return %2, %c0_i32_0 : i32, i32
  }
  func.func @transform_2(%arg0: i32, %arg1: i32) -> (i32, i32, i32) {
    %c0_i32 = arith.constant 0 : i32
    %c0_i32_0 = arith.constant 0 : i32
    %c0_i32_1 = arith.constant 0 : i32
    return %arg0, %c0_i32, %c0_i32_0 : i32, i32, i32
  }
}

</mosaic_0001>

<bundles_post_ra>
// kernel: tpu_custom_call.1
= control target key start
LH: loop header
LB: loop body
LE: loop exit
PB: predicated region body
PF: predicated region fallthrough
CT: control target
= control target key end

     0   :  { %7 = vsyncpa [#allocation3], 0  ;;  %s236_s0 = inlined_call_operand.hbm [shape: f32[16,128], index: 0, kind: input, shape index: {}]   ;;  %s237_s1 = inlined_call_operand.hbm [shape: f32[16,128], index: 1, kind: input, shape index: {}]   ;;  %s238_s2 = inlined_call_operand.hbm [shape: f32[1,8,128], index: 2, kind: output, shape index: {}]  }
   0x1   :  { %8 = vsyncpa [#allocation6], 0 }
   0x2   :  { %9 = vsyncpa [#allocation4], 0  ;;  %s20_s11 = sshll.u32 %s236_s0, 4  ;;  %s207_s12 = smov [#allocation2]   ;;  %s21_s11 = int_to_ptr.hbm [resolvable:$true] %s20_s11 }
   0x3   :  { %s22_s13 = sshll.u32 %s207_s12, 4  ;;  %s39_s16 = sshll.u32 %s237_s1, 4  ;;  %s23_s13 = int_to_ptr.vmem [resolvable:$true] %s22_s13  ;;  %s40_s16 = int_to_ptr.hbm [resolvable:$true] %s39_s16 }
   0x4   :  { %s208_s17 = smov 128   ;;  %s209_s18 = smov 8  }
   0x5   :  { %28 = dma.hbm_to_vmem [thread:$0]  %s21_s11, 256, %s23_s13, [#allocation3], %s208_s17, %s208_s17, %s209_s18  }
   0x6   :  { %s210_s19 = smov [#allocation5]  }
   0x7   :  { %s41_s20 = sshll.u32 %s210_s19, 4  ;;  %s42_s20 = int_to_ptr.vmem [resolvable:$true] %s41_s20 }
   0x8   :  { %47 = dma.hbm_to_vmem [thread:$0]  %s40_s16, 256, %s42_s20, [#allocation6], %s208_s17, %s208_s17, %s209_s18  }
   0x9   :  { %201 = dma.done.wait [#allocation3], 256  }
   0xa   :  { %202 = vsyncadd [#allocation3], 4294967040 }
   0xb   :  { %203 = dma.done.wait [#allocation6], 256  }
   0xc   :  { %204 = vsyncadd [#allocation6], 4294967040  ;;  %v69_v0 = vld [vmem:[#allocation2] sm:$0xff]  ;;  %v70_v1 = vld [vmem:[#allocation2 + $0x8] sm:$0xff]  ;;  %s211_s0 = smov [#allocation7]   ;;  %s100_s23 = sshll.u32 %s238_s2, 4  ;;  %s101_s23 = int_to_ptr.hbm [resolvable:$true] %s100_s23 }
   0xd   :  { %v71_v2 = vld [vmem:[#allocation5] sm:$0xff]  ;;  %v72_v3 = vld [vmem:[#allocation5 + $0x8] sm:$0xff]  ;;  %v73_v4 = vadd.f32 1.0, %v69_v0  ;;  %v74_v5 = vadd.f32 1.0, %v70_v1  ;;  %s98_s1 = sshll.u32 %s211_s0, 4  ;;  %s99_s1 = int_to_ptr.vmem [resolvable:$true] %s98_s1 }
   0xe   :  { %v79_v6 = vadd.f32 1.0, %v71_v2  ;;  %v80_v7 = vadd.f32 1.0, %v72_v3 }
   0xf   :  { %121 = vlog2.f32 %v73_v4 }
  0x10   :  { %123 = vlog2.f32 %v74_v5 }
  0x11   :  { %125 = vlog2.f32 %v79_v6 }
  0x12   :  { %127 = vlog2.f32 %v80_v7 }
  0x15   :  { %v122_v8 = vpop.eup %121 }
  0x16   :  { %v124_v9 = vpop.eup %123  ;;  %v76_v10 = vmul.f32 0.6931472, %v122_v8 }
  0x17   :  { %v126_v11 = vpop.eup %125  ;;  %v78_v12 = vmul.f32 0.6931472, %v124_v9 }
  0x18   :  { %v128_v13 = vpop.eup %127  ;;  %v82_v14 = vmul.f32 0.6931472, %v126_v11 }
  0x19   :  { %v84_v15 = vmul.f32 0.6931472, %v128_v13 }
  0x1a   :  { %v85_v16 = vsub.f32 %v76_v10, %v82_v14 }
  0x1b   :  { %v86_v17 = vsub.f32 %v78_v12, %v84_v15 }
  0x1c   :  { %v87_v18 = vmul.f32 %v85_v16, %v85_v16 }
  0x1d   :  { %v88_v19 = vmul.f32 %v86_v17, %v86_v17 }
  0x1f   :  { %v90_v20 = vadd.f32 %v88_v19, %v87_v18 }
  0x21   :  { %92 = vst [vmem:[#allocation7] sm:$0xff] %v90_v20 }
  0x22   :  { %103 = dma.vmem_to_hbm [thread:$0]  %s99_s1, 128, %s101_s23, [#allocation4]  }
  0x23   :  { %205 = dma.done.wait [#allocation4], 128  }
  0x24   :  { %206 = vsyncadd [#allocation4], 4294967168 }
  0x25   :  { %108 = vsyncpa [#allocation3], 1 }
  0x26   :  { %109 = vsyncpa [#allocation6], 1 }
  0x27   :  { %110 = vsyncpa [#allocation4], 1 }

</bundles_post_ra>
